<compile_context>
chip_gen: v7x
topology: tpu7x:2x2x1
jax: 0.10.0
libtpu: 0.0.40
codegen_flags: <defaults>
</compile_context>

<pallas_src>
import functools

import numpy as np
import jax
import jax.numpy as jnp
from jax import lax
from jax.experimental import pallas as pl
from jax.experimental.pallas import tpu as pltpu


def mlp_base_kernel(x_ref, w1_ref, b_ref, w2_ref, o_ref, *, chunk):
    # Resident operands: loaded once per grid step, hoisted out of the chunk loop.
    w1 = w1_ref[...]
    w2 = w2_ref[...]
    b1 = b_ref[0:1, :]          # (1, H) f32
    b2 = b_ref[1:2, :]          # (1, H) f32

    tile_b = x_ref.shape[0]     # static block shape
    n_chunks = tile_b // chunk

    def compute_chunk(r):
        x = x_ref[pl.ds(r, chunk), :]
        # Layer 1: Linear(num_inputs -> hidden) + ReLU  (bf16 x bf16 -> f32 acc)
        h1 = jnp.dot(x, w1, preferred_element_type=jnp.float32) + b1
        h1 = jnp.maximum(h1, 0.0).astype(w2.dtype)
        # Layer 2: Linear(hidden -> hidden) + ReLU
        h2 = jnp.dot(h1, w2, preferred_element_type=jnp.float32) + b2
        o_ref[pl.ds(r, chunk), :] = jnp.maximum(h2, 0.0).astype(o_ref.dtype)

    if n_chunks == 1:
        compute_chunk(0)
    else:
        def body(c, carry):
            compute_chunk(pl.multiple_of(c * chunk, chunk))
            return carry
        # Cap unroll at 2: keeps the pipelining win without vreg spills at big tiles.
        lax.fori_loop(0, n_chunks, body, 0, unroll=min(n_chunks, 2))


def _round_up(n, m):
    return ((n + m - 1) // m) * m


def _choose_tiling(b_padded):
    """Pick (tile_b, dimension_semantics) for a padded batch size."""
    candidates = [t for t in (1024, 512, 256, 128, 64, 32, 16)
                  if t <= b_padded and b_padded % t == 0]
    # Prefer the largest tile that still gives an even grid of >= 8 steps
    # (>= 4 steps per core under v7x megacore) so DMAs overlap compute.
    for t in candidates:
        g = b_padded // t
        if g >= 8 and g % 2 == 0:
            return t, ("parallel",)
    # Tiny batch: fewest steps, single-core grid so the weight set is fetched once.
    return candidates[0], ("arbitrary",)


def mlp_base_forward(x, w1, b1, w2, b2):
    B, D_in = x.shape
    H = w1.shape[1]
    assert w1.shape == (D_in, H)
    assert w2.shape == (H, H)
    assert b1.shape == (H,) and b2.shape == (H,)

    # Pad batch to a multiple of 16 (bf16 sublane packing); once >= 128 rows,
    # pad to a multiple of 128 (native MXU row granularity) -> unmasked stores.
    B_pad = _round_up(B, 16)
    if B_pad >= 128:
        B_pad = _round_up(B_pad, 128)
    if B_pad != B:
        x = jnp.pad(x, ((0, B_pad - B), (0, 0)))

    tile_b, dim_semantics = _choose_tiling(B_pad)
    chunk = min(128, tile_b)
    assert tile_b % chunk == 0
    grid = (B_pad // tile_b,)

    # Biases collapsed into one (2, H) f32 operand.
    b_all = jnp.stack([b1, b2], axis=0).astype(jnp.float32)

    itemsize = x.dtype.itemsize
    resident_bytes = w1.size * w1.dtype.itemsize + w2.size * w2.dtype.itemsize + b_all.nbytes
    streamed_bytes = 2 * tile_b * D_in * itemsize + 2 * tile_b * H * itemsize  # 2-deep x/out
    scratch_bytes = 4 * chunk * H * 4                                          # f32 intermediates
    # TODO(synk): resident-W2 design only; if H grows toward ~4096 (bf16 W2 = 32 MB),
    # switch W2 to a K-tiled reduction grid (f32 acc scratch + pl.when init/finalize)
    # before it blows v7x's 32 MiB scoped / 64 MiB physical VMEM.
    assert resident_bytes <= 24 * 1024 * 1024, "H too large for resident-weight kernel"
    vmem_limit = min(64 * 1024 * 1024,
                     max(32 * 1024 * 1024, 2 * (resident_bytes + streamed_bytes + scratch_bytes)))

    cost = pl.CostEstimate(
        flops=2 * B_pad * (D_in * H + H * H),
        transcendentals=0,
        bytes_accessed=(B_pad * D_in * itemsize + resident_bytes + B_pad * H * itemsize),
    )

    out = pl.pallas_call(
        functools.partial(mlp_base_kernel, chunk=chunk),
        out_shape=jax.ShapeDtypeStruct((B_pad, H), x.dtype),
        grid_spec=pltpu.PrefetchScalarGridSpec(
            num_scalar_prefetch=0,
            grid=grid,
            in_specs=[
                # batch tile of x: streamed (default double-buffered).
                # NOTE: raise to pipeline_mode=pl.Buffered(3) only if xprof shows the
                # x/out DMA exposed with a long grid.
                pl.BlockSpec((tile_b, D_in), lambda i: (i, 0)),
                # resident operands: constant index_map -> single buffer is enough
                pl.BlockSpec((D_in, H), lambda i: (0, 0), pipeline_mode=pl.Buffered(1)),
                pl.BlockSpec((2, H), lambda i: (0, 0), pipeline_mode=pl.Buffered(1)),
                pl.BlockSpec((H, H), lambda i: (0, 0), pipeline_mode=pl.Buffered(1)),
            ],
            out_specs=pl.BlockSpec((tile_b, H), lambda i: (i, 0)),
        ),
        compiler_params=pltpu.CompilerParams(
            dimension_semantics=dim_semantics,
            vmem_limit_bytes=int(vmem_limit),
        ),
        cost_estimate=cost,
    )(x, w1, b_all, w2)

    return out[:B] if B_pad != B else out


def orthogonal_init(key, shape, gain):
    """Deterministic orthogonal init (matches semantics of nn.init.orthogonal_)."""
    rows, cols = shape
    n = max(rows, cols)
    a = jax.random.normal(key, (n, n), dtype=jnp.float32)
    q, r = jnp.linalg.qr(a)
    q = q * jnp.sign(jnp.diag(r))  # sign fix, as torch does
    return gain * q[:rows, :cols]


def reference_forward(x, w1, b1, w2, b2):
    """f32 reference that mirrors the kernel's bf16-input / f32-accumulate math."""
    f32 = jnp.float32
    hi = jax.lax.Precision.HIGHEST
    h1 = jnp.dot(x.astype(f32), w1.astype(f32), precision=hi) + b1.astype(f32)
    h1 = jnp.maximum(h1, 0.0).astype(w2.dtype).astype(f32)  # kernel rounds h1 to bf16
    h2 = jnp.dot(h1, w2.astype(f32), precision=hi) + b2.astype(f32)
    return jnp.maximum(h2, 0.0)


if __name__ == "__main__":
    # MLPBase default hidden_size=256; num_inputs=128 (lane-aligned).
    D_in, H = 128, 256

    key = jax.random.PRNGKey(0)
    k_x, k_w1, k_w2 = jax.random.split(key, 3)

    gain = float(np.sqrt(2))
    # PyTorch Linear weight is (out, in); we store its transpose (in, out), in bf16.
    w1 = orthogonal_init(k_w1, (H, D_in), gain).T.astype(jnp.bfloat16)   # (D_in, H)
    b1 = jnp.zeros((H,), dtype=jnp.float32)                              # constant_(0)
    w2 = orthogonal_init(k_w2, (H, H), gain).T.astype(jnp.bfloat16)      # (H, H)
    b2 = jnp.zeros((H,), dtype=jnp.float32)

    ok = True
    # Case 1: batch large enough for an 8-step parallel grid (exercises pipelining).
    # Case 2: tiny, non-aligned RL-style batch (exercises padding + single-core path).
    for B in (1024, 10):
        x = jax.random.normal(k_x, (B, D_in), dtype=jnp.float32).astype(jnp.bfloat16)
        out = mlp_base_forward(x, w1, b1, w2, b2)
        out = jax.block_until_ready(out)
        ref = reference_forward(x, w1, b1, w2, b2)
        np.testing.assert_allclose(
            np.asarray(out, dtype=np.float32), np.asarray(ref, dtype=np.float32),
            rtol=2e-2, atol=2e-2)

    print("KERNEL_OK")
</pallas_src>

<mosaic_0001>
module attributes {stable_mosaic.version = 11 : i64} {
  func.func @mlp_base_kernel(%arg0: i32, %arg1: memref<128x128xbf16, #tpu.memory_space<vmem>>, %arg2: memref<128x256xbf16, #tpu.memory_space<vmem>>, %arg3: memref<2x256xf32, #tpu.memory_space<vmem>>, %arg4: memref<256x256xbf16, #tpu.memory_space<vmem>>, %arg5: memref<128x256xbf16, #tpu.memory_space<vmem>>) attributes {dimension_semantics = [#tpu.dimension_semantics<parallel>], iteration_bounds = array<i64: 8>, scalar_prefetch = 0 : i64, scratch_operands = 0 : i64, tpu.core_type = #tpu.core_type<tc>, window_params = [{transform_indices = @transform_0, window_bounds = array<i64: 128, 128>}, {pipeline_mode = #tpu.pipeline_mode<synchronous>, transform_indices = @transform_1, window_bounds = array<i64: 128, 256>}, {pipeline_mode = #tpu.pipeline_mode<synchronous>, transform_indices = @transform_2, window_bounds = array<i64: 2, 256>}, {pipeline_mode = #tpu.pipeline_mode<synchronous>, transform_indices = @transform_3, window_bounds = array<i64: 256, 256>}, {transform_indices = @transform_4, window_bounds = array<i64: 128, 256>}]} {
    %c0 = arith.constant 0 : index
    %c0_0 = arith.constant 0 : index
    %0 = vector.load %arg2[%c0, %c0_0] : memref<128x256xbf16, #tpu.memory_space<vmem>>, vector<128x256xbf16>
    %c0_1 = arith.constant 0 : index
    %c0_2 = arith.constant 0 : index
    %1 = vector.load %arg4[%c0_1, %c0_2] : memref<256x256xbf16, #tpu.memory_space<vmem>>, vector<256x256xbf16>
    %c0_3 = arith.constant 0 : index
    %c0_4 = arith.constant 0 : index
    %2 = vector.load %arg3[%c0_3, %c0_4] : memref<2x256xf32, #tpu.memory_space<vmem>>, vector<1x256xf32>
    %c1 = arith.constant 1 : index
    %c0_5 = arith.constant 0 : index
    %3 = vector.load %arg3[%c1, %c0_5] : memref<2x256xf32, #tpu.memory_space<vmem>>, vector<1x256xf32>
    %c0_6 = arith.constant 0 : index
    %c0_7 = arith.constant 0 : index
    %4 = vector.load %arg1[%c0_6, %c0_7] : memref<128x128xbf16, #tpu.memory_space<vmem>>, vector<128x128xbf16>
    %cst = arith.constant dense<0.000000e+00> : vector<128x256xf32>
    %5 = tpu.matmul %4, %0, %cst {dimension_numbers = #tpu.dot_dimension_numbers<[1], [0], [0], [1], [0, 0, 1, 1], [], []>} : vector<128x128xbf16>, vector<128x256xbf16>, vector<128x256xf32> -> vector<128x256xf32>
    %6 = vector.broadcast %2 : vector<1x256xf32> to vector<128x256xf32>
    %7 = arith.addf %5, %6 : vector<128x256xf32>
    %cst_8 = arith.constant 0.000000e+00 : f32
    %8 = vector.broadcast %cst_8 : f32 to vector<128x256xf32>
    %9 = arith.maximumf %7, %8 : vector<128x256xf32>
    %10 = arith.truncf %9 : vector<128x256xf32> to vector<128x256xbf16>
    %cst_9 = arith.constant dense<0.000000e+00> : vector<128x256xf32>
    %11 = tpu.matmul %10, %1, %cst_9 {dimension_numbers = #tpu.dot_dimension_numbers<[1], [0], [0], [1], [0, 0, 1, 1], [], []>} : vector<128x256xbf16>, vector<256x256xbf16>, vector<128x256xf32> -> vector<128x256xf32>
    %12 = vector.broadcast %3 : vector<1x256xf32> to vector<128x256xf32>
    %13 = arith.addf %11, %12 : vector<128x256xf32>
    %cst_10 = arith.constant 0.000000e+00 : f32
    %14 = vector.broadcast %cst_10 : f32 to vector<128x256xf32>
    %15 = arith.maximumf %13, %14 : vector<128x256xf32>
    %16 = arith.truncf %15 : vector<128x256xf32> to vector<128x256xbf16>
    %c0_11 = arith.constant 0 : index
    %c0_12 = arith.constant 0 : index
    %17 = vector.load %arg5[%c0_11, %c0_12] : memref<128x256xbf16, #tpu.memory_space<vmem>>, vector<128x256xbf16>
    tpu.vector_store %arg5[%c0_11, %c0_12], %16 {strides = array<i32>} : memref<128x256xbf16, #tpu.memory_space<vmem>>, vector<128x256xbf16>,
    return
  }
  func.func @transform_0(%arg0: i32) -> (i32, i32) {
    %c0_i32 = arith.constant 0 : i32
    %c0_i32_0 = arith.constant 0 : i32
    return %arg0, %c0_i32 : i32, i32
  }
  func.func @transform_1(%arg0: i32) -> (i32, i32) {
    %c0_i32 = arith.constant 0 : i32
    %c0_i32_0 = arith.constant 0 : i32
    %c0_i32_1 = arith.constant 0 : i32
    return %c0_i32, %c0_i32_0 : i32, i32
  }
  func.func @transform_2(%arg0: i32) -> (i32, i32) {
    %c0_i32 = arith.constant 0 : i32
    %c0_i32_0 = arith.constant 0 : i32
    %c0_i32_1 = arith.constant 0 : i32
    return %c0_i32, %c0_i32_0 : i32, i32
  }
  func.func @transform_3(%arg0: i32) -> (i32, i32) {
    %c0_i32 = arith.constant 0 : i32
    %c0_i32_0 = arith.constant 0 : i32
    %c0_i32_1 = arith.constant 0 : i32
    return %c0_i32, %c0_i32_0 : i32, i32
  }
  func.func @transform_4(%arg0: i32) -> (i32, i32) {
    %c0_i32 = arith.constant 0 : i32
    %c0_i32_0 = arith.constant 0 : i32
    return %arg0, %c0_i32 : i32, i32
  }
}

</mosaic_0001>

<bundles_post_ra>
// kernel: tpu_custom_call.1
= control target key start
LH: loop header
LB: loop body
LE: loop exit
PB: predicated region body
PF: predicated region fallthrough
CT: control target
= control target key end

     0   :  { %9 = vsyncpa [#allocation3], 0  ;;  %s1994_s0 = inlined_call_operand.hbm [shape: bf16[1024,128], index: 0, kind: input, shape index: {}]   ;;  %s1995_s1 = inlined_call_operand.hbm [shape: bf16[128,256], index: 1, kind: input, shape index: {}]   ;;  %s1996_s2 = inlined_call_operand.vmem [shape: f32[2,256], index: 2, kind: input, shape index: {}]   ;;  %s1997_s3 = inlined_call_operand.hbm [shape: bf16[256,256], index: 3, kind: input, shape index: {}]   ;;  %s1998_s4 = inlined_call_operand.hbm [shape: bf16[1024,256], index: 4, kind: output, shape index: {}]  }
   0x1   :  { %11 = vsyncpa [#allocation3 + $0x1], 0 }
   0x2   :  { %12 = vsyncpa [#allocation6], 0 }
   0x3   :  { %13 = vsyncpa [#allocation4], 0 }
   0x4   :  { %15 = vsyncpa [#allocation4 + $0x1], 0  ;;  %s1641_s15 = smov 0   ;;  %s1643_s16 = smov 0  }
   0x5   :  { %s1645_s17 = smov 0   ;;  %s1647_s18 = smov 0  }
   0x6 LB: > { %s1662_s19 = sadd.s32 4294967295, %s1603_s18   ;;  %s1150_s20 = sadd.s32 4294967294, %s1603_s18   ;;  %s1603_s18 = sphi %s1647_s18, %s2017_s18   ;;  %s1599_s17 = sphi %s1645_s17, %s2016_s17   ;;  %s1595_s16 = sphi %s1643_s16, %s2015_s16   ;;  %s1591_s15 = sphi %s1641_s15, %s2014_s15  }
   0x7   : > { %p41_p0 = scmp.ne.s32.totalorder %s1595_s16, %s1591_s15  ;;  %p1999_p1 = scmp.eq.s32.totalorder %s1662_s19, 0 }
   0x8   : > { %p134_p3 = scmp.eq.s32.totalorder %s1150_s20, 7  ;;  %p1151_p5 = scmp.ge.s32.totalorder %s1603_s18, 1 }
   0x9   : > { %p1671_p4 = por %p1999_p1, %p41_p0  ;;  %p141_p7 = scmp.lt.s32.totalorder %s1603_s18, 9 }
   0xa   : > { %p1676_p6 = por %p134_p3, %p41_p0  ;;  %s1605_s24 = smov [#allocation5]  }
   0xb   : > { %s2002_s21 = scalar_select %p1671_p4, 1, 0 }
   0xc   : > { %s2003_s22 = scalar_select %p1676_p6, 1, 0 }
   0xd   : > { %p1681_p8 = pnand %p1151_p5, %p141_p7  ;;  %s153_s25 = sshll.u32 %s1605_s24, 4  ;;  %s154_s25 = int_to_ptr.vmem [resolvable:$true] %s153_s25 }
   0xe   : > { %s1606_s27 = smov [#allocation7]   ;;  %s1447_s5 = scalar_lea.hbm %s1995_s1, 2048 }
   0xf   : > { %s2004_s23 = scalar_select %p1681_p8, 1, 0 }
  0x10   : > { %p1305_p9 = pneg %p1681_p8  ;;  %s169_s28 = sshll.u32 %s1606_s27, 4  ;;  %s1693_s28 = int_to_ptr.vmem [resolvable:$true] %s169_s28 }
  0x11   : > { %p1448_p11 = scmp.ne.s32.totalorder %s1995_s1, %s1447_s5  ;;  %p1454_p3 = scmp.lt.u32.totalorder %s1447_s5, %s1995_s1 }
  0x12   : > { %p1689_p10 = pnand %p1305_p9, %p1999_p1 }
  0x14   : > { %p1449_p12 = pneg %p1689_p10 }
  0x16   : > { %p1450_p13 = pnand %p1449_p12, %p1448_p11 }
  0x18   : > { %p1451_p0 = pneg %p1450_p13 }
  0x1a   : > { %p1456_p5 = pnand %p1454_p3, %p1451_p0 }
  0x1c   : > { %1459 = shalt.err (!%p1456_p5)
}
  0x1d   : > { %s1460_s10 = scalar_lea.vmem %s154_s25, 2048  ;;  %p1468_p2 = scmp.lt.s32.totalorder %s154_s25, %s154_s25 }
  0x1e   : > { %p1461_p7 = scmp.ne.s32.totalorder %s154_s25, %s1460_s10  ;;  %p1469_p6 = scmp.lt.s32.totalorder %s1460_s10, %s1460_s10 }
  0x20   : > { %p1463_p9 = pnand %p1461_p7, %p1449_p12  ;;  %p1470_p4 = por %p1469_p6, %p1468_p2 }
  0x22   : > { %p1464_p1 = pneg %p1463_p9 }
  0x24   : > { %p1471_p8 = pnand %p1470_p4, %p1464_p1 }
  0x26   : > { %1474 = shalt.err (!%p1471_p8)
}
  0x27   : > { %s1607_s11 = smov 128   ;;  %s1608_s12 = smov 8  }
  0x28   : > { %1308 = dma.hbm_to_vmem [thread:$0]  (!%p1689_p10), %s1995_s1, 2048, %s154_s25, [#allocation6], %s1607_s11, %s1607_s11, %s1608_s12  }
  0x29   : > { %s1475_s27 = scalar_lea.hbm %s1997_s3, 4096 }
  0x2a   : > { %p1476_p11 = scmp.ne.s32.totalorder %s1997_s3, %s1475_s27  ;;  %p1482_p4 = scmp.lt.u32.totalorder %s1475_s27, %s1997_s3 }
  0x2c   : > { %p1478_p1 = pnand %p1476_p11, %p1449_p12 }
  0x2e   : > { %p1479_p2 = pneg %p1478_p1 }
  0x30   : > { %p1484_p6 = pnand %p1482_p4, %p1479_p2 }
  0x32   : > { %1487 = shalt.err (!%p1484_p6)
}
  0x33   : > { %s1488_s25 = scalar_lea.vmem %s1693_s28, 4096  ;;  %p1496_p3 = scmp.lt.s32.totalorder %s1693_s28, %s1693_s28 }
  0x34   : > { %p1489_p8 = scmp.ne.s32.totalorder %s1693_s28, %s1488_s25  ;;  %p1497_p5 = scmp.lt.s32.totalorder %s1488_s25, %s1488_s25 }
  0x36   : > { %p1491_p13 = pnand %p1489_p8, %p1449_p12  ;;  %p1498_p7 = por %p1497_p5, %p1496_p3 }
  0x38   : > { %p1492_p0 = pneg %p1491_p13 }
  0x3a   : > { %p1499_p9 = pnand %p1498_p7, %p1492_p0 }
  0x3c   : > { %1502 = shalt.err (!%p1499_p9)
}
  0x3d   : > { %1311 = dma.hbm_to_vmem [thread:$0]  (!%p1689_p10), %s1997_s3, 4096, %s1693_s28, [#allocation6], %s1607_s11, %s1607_s11, %s1608_s12  }
  0x3e   : > { %s1743_s9 = sadd.s32 1, %s1603_s18   ;;  %s28_s26 = sadd.s32 1, %s1599_s17 }
  0x3f   : > { %s25_s10 = ssub.s32 %s1603_s18, %s1743_s9  ;;  %p35_p12 = scmp.ne.s32.totalorder %s1599_s17, %s1595_s16 }
  0x40   : > { %p26_p11 = scmp.eq.s32.totalorder %s25_s10, 0  ;;  %p36_p1 = scmp.eq.s32.totalorder %s1603_s18, 0 }
  0x41   : > { %p2006_p2 = scmp.eq.s32.totalorder %s1662_s19, 7  ;;  %p1322_p6 = scmp.lt.s32.totalorder %s1603_s18, 8 }
  0x42   : > { %s1759_s14 = scalar_select %p26_p11, %s1599_s17, %s28_s26  }
  0x43   : > { %p1753_p4 = por %p2006_p2, %p35_p12  ;;  %p37_p8 = por %p36_p1, %p35_p12 }
  0x44   : > { %s183_s20 = sand.u32 1, %s1599_s17   ;;  %s1242_s28 = sshll.u32 %s1603_s18, 10 }
  0x45   : > { %s1155_s24 = sshll.u32 %s183_s20, 6  ;;  %s1766_s27 = scalar_lea.hbm %s1994_s0, %s1242_s28 }
  0x46   : > { %s187_s29 = scalar_lea.vmem [#allocation2], %s1155_s24  ;;  %p1770_p10 = pnand %p1322_p6, %p37_p8 }
  0x47   : > { %s194_s30 = sshll.u32 %s187_s29, 4  ;;  %s1774_s6 = scalar_lea.sflag [#allocation3], %s183_s20  ;;  %s1768_s30 = int_to_ptr.vmem [resolvable:$true] %s194_s30 }
  0x48   : > { %s1503_s25 = scalar_lea.hbm %s1766_s27, 1024  ;;  %p1505_p0 = pneg %p1770_p10 }
  0x49   : > { %p1504_p13 = scmp.ne.s32.totalorder %s1766_s27, %s1503_s25  ;;  %s1508_s26 = scalar_lea.hbm %s1994_s0, 8192 }
  0x4a   : > { %p1509_p7 = scmp.lt.u32.totalorder %s1766_s27, %s1994_s0  ;;  %p1510_p9 = scmp.lt.u32.totalorder %s1508_s26, %s1503_s25 }
  0x4b   : > { %p1506_p3 = pnand %p1505_p0, %p1504_p13  ;;  %p1512_p11 = scmp.lt.u32.totalorder %s1503_s25, %s1766_s27 }
  0x4c   : > { %p1511_p12 = por %p1510_p9, %p1509_p7 }
  0x4d   : > { %p1507_p5 = pneg %p1506_p3 }
  0x4e   : > { %p1513_p1 = por %p1512_p11, %p1511_p12 }
  0x50   : > { %p1514_p2 = pnand %p1513_p1, %p1507_p5 }
  0x52   : > { %1517 = shalt.err (!%p1514_p2)
}
  0x53   : > { %s1518_s20 = scalar_lea.vmem %s1768_s30, 1024  ;;  %s1609_s28 = smov [#allocation2]  }
  0x54   : > { %p1519_p6 = scmp.ne.s32.totalorder %s1768_s30, %s1518_s20  ;;  %s1523_s11 = sshll.u32 %s1609_s28, 4  ;;  %s1524_s11 = int_to_ptr.vmem [resolvable:$false] %s1523_s11 }
  0x55   : > { %s1525_s12 = scalar_lea.vmem %s1524_s11, 2048  ;;  %p1526_p3 = scmp.lt.s32.totalorder %s1768_s30, %s1524_s11 }
  0x56   : > { %p1521_p8 = pnand %p1519_p6, %p1505_p0  ;;  %p1527_p7 = scmp.lt.s32.totalorder %s1525_s12, %s1518_s20 }
  0x58   : > { %p1522_p13 = pneg %p1521_p8  ;;  %p1528_p9 = por %p1527_p7, %p1526_p3 }
  0x5a   : > { %p1529_p12 = pnand %p1528_p9, %p1522_p13 }
  0x5c   : > { %1532 = shalt.err (!%p1529_p12)
}
  0x5d   : > { %s1610_s29 = smov 64   ;;  %s1611_s25 = smov 4  }
  0x5e   : > { %1315 = dma.hbm_to_vmem [thread:$0]  (!%p1770_p10), %s1766_s27, 1024, %s1768_s30, %s1774_s6, %s1610_s29, %s1610_s29, %s1611_s25  }
  0x5f   : > { %p2009_p0 = scmp.ne.s32.totalorder %s2004_s23, 0 }
  0x60   : > { %s1805_s7 = sand.u32 (!%p2009_p0), 1, %s1595_s16   ;;  %p2010_p5 = scmp.ne.s32.totalorder (!%p2009_p0), %s2002_s21, 0 }
  0x61   : > { %206 = sbr.rel (%p2009_p0) target bundleno = 655 (0x28f), region = 36  ;;  %s1159_s8 = sshll.u32 (!%p2009_p0), %s1805_s7, 6 }
  0x62   : > { %s209_s26 = scalar_lea.sflag (!%p2009_p0), [#allocation3], %s1805_s7  ;;  %s1809_s10 = scalar_lea.vmem (!%p2009_p0), [#allocation2], %s1159_s8 }
  0x68   : > { %1578 = dma.done.wait (%p2010_p5), %s209_s26, 1024  }
  0x69   : > { %1580 = vsyncadd (%p2010_p5), %s209_s26, 4294966272  ;;  %p2011_p10 = scmp.eq.s32.totalorder %s1662_s19, 0 }
  0x6b   : > { %1582 = dma.done.wait (%p2011_p10), [#allocation6], 6144   ;;  %p2012_p11 = pmov %p2011_p10 }
  0x6c   : > { %v1612_v0 = vmov 0   ;;  %v1367_v1 = vld [vmem:[#allocation5 + $0x4] ss:$8 sps:$4 sm:$0xff]   ;;  %v1369_v2 = vld [vmem:[#allocation5] ss:$8 sps:$4 sm:$0xff]   ;;  %v1393_v34 = vld [vmem:[%s1809_s10 + $0x10] sm:$0xff]   ;;  %v316_v57 = vlaneseq }
  0x6d   : > { %1584 = vsyncadd (%p2012_p11), [#allocation6], 4294961152  ;;  %486 = vmatprep.mubr.bf16.mxu0 %v1612_v0  ;;  %454 = vmatprep.subr.bf16.mxu0 %v1367_v1  ;;  %v1370_v3 = vld [vmem:[#allocation5 + $0x14] ss:$8 sps:$4 sm:$0xff]   ;;  %v1372_v4 = vld [vmem:[#allocation5 + $0x10] ss:$8 sps:$4 sm:$0xff]  }
  0x6e   : > { %455 = vmatpush1.bf16.msra.mxu0 %v1369_v2  ;;  %v1373_v5 = vld [vmem:[#allocation5 + $0x24] ss:$8 sps:$4 sm:$0xff]   ;;  %v1375_v6 = vld [vmem:[#allocation5 + $0x20] ss:$8 sps:$4 sm:$0xff]   ;;  %v1376_v7 = vld [vmem:[#allocation5 + $0x34] ss:$8 sps:$4 sm:$0xff]  }
  0x6f   : > { %456 = vmatprep.subr.bf16.mxu0 %v1370_v3  ;;  %v1378_v8 = vld [vmem:[#allocation5 + $0x30] ss:$8 sps:$4 sm:$0xff]   ;;  %v1379_v9 = vld [vmem:[#allocation5 + $0x44] ss:$8 sps:$4 sm:$0xff]   ;;  %v1381_v10 = vld [vmem:[#allocation5 + $0x40] ss:$8 sps:$4 sm:$0xff]  }
  0x70   : > { %v1382_v11 = vld [vmem:[#allocation5 + $0x54] ss:$8 sps:$4 sm:$0xff]   ;;  %v1384_v12 = vld [vmem:[#allocation5 + $0x50] ss:$8 sps:$4 sm:$0xff]   ;;  %v1385_v13 = vld [vmem:[#allocation5 + $0x64] ss:$8 sps:$4 sm:$0xff]  }
  0x71   : > { %v1401_v14 = vld [vmem:[#allocation7 + $0x4] ss:$8 sps:$4 sm:$0xff]   ;;  %v1399_v15 = vld [vmem:[#allocation7] ss:$8 sps:$4 sm:$0xff]   ;;  %v1404_v16 = vld [vmem:[#allocation7 + $0x14] ss:$8 sps:$4 sm:$0xff]  }
  0x72   : > { %457 = vmatpush1.bf16.msra.mxu0 %v1372_v4  ;;  %1261 = vmatprep.subr.bf16.mxu1 %v1401_v14  ;;  %v1387_v17 = vld [vmem:[#allocation5 + $0x60] ss:$8 sps:$4 sm:$0xff]   ;;  %v1388_v18 = vld [vmem:[#allocation5 + $0x74] ss:$8 sps:$4 sm:$0xff]   ;;  %v1402_v19 = vld [vmem:[#allocation7 + $0x10] ss:$8 sps:$4 sm:$0xff]  }
  0x73   : > { %458 = vmatprep.subr.bf16.mxu0 %v1373_v5  ;;  %1277 = vmatpush1.bf16.msra.mxu1 %v1399_v15  ;;  %v1407_v20 = vld [vmem:[#allocation7 + $0x24] ss:$8 sps:$4 sm:$0xff]   ;;  %v1390_v21 = vld [vmem:[#allocation5 + $0x70] ss:$8 sps:$4 sm:$0xff]   ;;  %v1405_v22 = vld [vmem:[#allocation7 + $0x20] ss:$8 sps:$4 sm:$0xff]  }
  0x74   : > { %1262 = vmatprep.subr.bf16.mxu1 %v1404_v16  ;;  %v1410_v23 = vld [vmem:[#allocation7 + $0x34] ss:$8 sps:$4 sm:$0xff]   ;;  %v1391_v24 = vld [vmem:[%s1809_s10] sm:$0xff]   ;;  %v1408_v25 = vld [vmem:[#allocation7 + $0x30] ss:$8 sps:$4 sm:$0xff]   ;;  %v1835_v58 = vshrl.u32 %v316_v57, 7 }
  0x75   : > { %v1413_v26 = vld [vmem:[#allocation7 + $0x44] ss:$8 sps:$4 sm:$0xff]   ;;  %v1411_v27 = vld [vmem:[#allocation7 + $0x40] ss:$8 sps:$4 sm:$0xff]   ;;  %v1416_v29 = vld [vmem:[#allocation7 + $0x54] ss:$8 sps:$4 sm:$0xff]  }
  0x76   : > { %459 = vmatpush1.bf16.msra.mxu0 %v1375_v6  ;;  %v1392_v28 = vld [vmem:[%s1809_s10 + $0x8] sm:$0xff]   ;;  %v1414_v30 = vld [vmem:[#allocation7 + $0x50] ss:$8 sps:$4 sm:$0xff]   ;;  %v1422_v33 = vld [vmem:[#allocation7 + $0x74] ss:$8 sps:$4 sm:$0xff]   ;;  %v318_v59 = vsub.s32 0, %v1835_v58 }
  0x77   : > { %460 = vmatprep.subr.bf16.mxu0 %v1376_v7  ;;  %1278 = vmatpush1.bf16.msra.mxu1 %v1402_v19  ;;  %v1419_v31 = vld [vmem:[#allocation7 + $0x64] ss:$8 sps:$4 sm:$0xff]   ;;  %v1417_v32 = vld [vmem:[#allocation7 + $0x60] ss:$8 sps:$4 sm:$0xff]   ;;  %v1420_v35 = vld [vmem:[#allocation7 + $0x70] ss:$8 sps:$4 sm:$0xff]  }
  0x78   : > { %1263 = vmatprep.subr.bf16.mxu1 %v1407_v20  ;;  %v1425_v36 = vld [vmem:[#allocation7 + $0x84] ss:$8 sps:$4 sm:$0xff]   ;;  %v1423_v37 = vld [vmem:[#allocation7 + $0x80] ss:$8 sps:$4 sm:$0xff]   ;;  %v1428_v38 = vld [vmem:[#allocation7 + $0x94] ss:$8 sps:$4 sm:$0xff]  }
  0x79   : > { %v1394_v39 = vld [vmem:[%s1809_s10 + $0x18] sm:$0xff]   ;;  %v1431_v41 = vld [vmem:[#allocation7 + $0xa4] ss:$8 sps:$4 sm:$0xff]   ;;  %v1429_v42 = vld [vmem:[#allocation7 + $0xa0] ss:$8 sps:$4 sm:$0xff]   ;;  %v322_v61 = vsub.s32 1, %v1835_v58 }
  0x7a   : > { %461 = vmatpush1.bf16.msra.mxu0 %v1378_v8  ;;  %v1426_v40 = vld [vmem:[#allocation7 + $0x90] ss:$8 sps:$4 sm:$0xff]   ;;  %v1434_v43 = vld [vmem:[#allocation7 + $0xb4] ss:$8 sps:$4 sm:$0xff]   ;;  %v1395_v44 = vld [vmem:[%s1809_s10 + $0x20] sm:$0xff]   ;;  %s1162_s5 = sshll.u32 %s1805_s7, 7 }
  0x7b   : > { %462 = vmatprep.subr.bf16.mxu0 %v1379_v9  ;;  %1279 = vmatpush1.bf16.msra.mxu1 %v1405_v22  ;;  %v1432_v45 = vld [vmem:[#allocation7 + $0xb0] ss:$8 sps:$4 sm:$0xff]   ;;  %v1437_v46 = vld [vmem:[#allocation7 + $0xc4] ss:$8 sps:$4 sm:$0xff]   ;;  %v1435_v47 = vld [vmem:[#allocation7 + $0xc0] ss:$8 sps:$4 sm:$0xff]  }
  0x7c   : > { %1264 = vmatprep.subr.bf16.mxu1 %v1410_v23  ;;  %v1440_v48 = vld [vmem:[#allocation7 + $0xd4] ss:$8 sps:$4 sm:$0xff]   ;;  %v1396_v49 = vld [vmem:[%s1809_s10 + $0x28] sm:$0xff]   ;;  %v1438_v50 = vld [vmem:[#allocation7 + $0xd0] ss:$8 sps:$4 sm:$0xff]   ;;  %s1898_s6 = scalar_lea.vmem [#allocation8], %s1162_s5 }
  0x7d   : > { %v1397_v51 = vld [vmem:[%s1809_s10 + $0x30] sm:$0xff]   ;;  %v1398_v52 = vld [vmem:[%s1809_s10 + $0x38] sm:$0xff]   ;;  %v1443_v53 = vld [vmem:[#allocation7 + $0xe4] ss:$8 sps:$4 sm:$0xff]   ;;  %s1260_s24 = sshll.u32 %s1662_s19, 11  ;;  %s1058_s20 = sshll.u32 %s1898_s6, 4  ;;  %s1949_s20 = int_to_ptr.vmem [resolvable:$true] %s1058_s20 }
  0x7e   : > { %463 = vmatpush1.bf16.msra.mxu0 %v1381_v10  ;;  %v1441_v54 = vld [vmem:[#allocation7 + $0xe0] ss:$8 sps:$4 sm:$0xff]   ;;  %v1446_v55 = vld [vmem:[#allocation7 + $0xf4] ss:$8 sps:$4 sm:$0xff]   ;;  %v1444_v56 = vld [vmem:[#allocation7 + $0xf0] ss:$8 sps:$4 sm:$0xff]   ;;  %s1947_s12 = scalar_lea.hbm %s1998_s4, %s1260_s24 }
  0x7f   : > { %464 = vmatprep.subr.bf16.mxu0 %v1382_v11  ;;  %1280 = vmatpush1.bf16.msra.mxu1 %v1408_v25  ;;  %v296_v60 = vld [vmem:[%s1996_s2] ss:$2 sm:$0x3]  ;;  %s1044_s29 = scalar_lea.sflag [#allocation4], %s1805_s7  ;;  %s1533_s25 = scalar_lea.vmem %s1949_s20, 2048 }
  0x80   : > { %1265 = vmatprep.subr.bf16.mxu1 %v1413_v26  ;;  %v1844_v62 = vrot.slane %v296_v60, %v318_v59  ;;  %v1848_v63 = vrot.slane %v296_v60, %v322_v61  ;;  %p1534_p1 = scmp.ne.s32.totalorder %s1949_s20, %s1533_s25  ;;  %s1613_s19 = smov [#allocation8]  }
  0x81   : > { %s1537_s8 = sshll.u32 %s1613_s19, 4  ;;  %s1538_s8 = int_to_ptr.vmem [resolvable:$false] %s1537_s8 }
  0x82   : > { %465 = vmatpush1.bf16.msra.mxu0 %v1384_v12  ;;  %p1535_p2 = pnand %p1534_p1, %p1753_p4  ;;  %s1539_s26 = scalar_lea.vmem %s1538_s8, 4096 }
  0x83   : > { %466 = vmatprep.subr.bf16.mxu0 %v1385_v13  ;;  %1281 = vmatpush1.bf16.msra.mxu1 %v1411_v27  ;;  %p1540_p8 = scmp.lt.s32.totalorder %s1949_s20, %s1538_s8  ;;  %p1541_p13 = scmp.lt.s32.totalorder %s1539_s26, %s1533_s25 }
  0x84   : > { %1266 = vmatprep.subr.bf16.mxu1 %v1416_v29  ;;  %p1536_p6 = pneg %p1535_p2 }
  0x85   : > { %p1542_p3 = por %p1541_p13, %p1540_p8 }
  0x86   : > { %467 = vmatpush1.bf16.msra.mxu0 %v1387_v17 }
  0x87   : > { %468 = vmatprep.subr.bf16.mxu0 %v1388_v18  ;;  %1282 = vmatpush1.bf16.msra.mxu1 %v1414_v30  ;;  %p1543_p7 = pnand %p1542_p3, %p1536_p6 }
  0x88   : > { %1267 = vmatprep.subr.bf16.mxu1 %v1419_v31 }
  0x8a   : > { %469 = vmatpush1.bf16.msra.mxu0 %v1390_v21 }
  0x8b   : > { %786 = vmatprep.subr.bf16.mxu0 %v1401_v14  ;;  %1283 = vmatpush1.bf16.msra.mxu1 %v1417_v32 }
  0x8c   : > { %1268 = vmatprep.subr.bf16.mxu1 %v1422_v33 }
  0x8d   : > { %487 = vmatmul.mubr.bf16.vlgmr.msra.gmra.mrb[0].mxu0 %v1391_v24 }
  0x8e   : > { %496 = vmatprep.mubr.bf16.mxu0 %v1612_v0  ;;  %787 = vmatpush1.bf16.msra.mxu0 %v1399_v15 }
  0x8f   : > { %788 = vmatprep.subr.bf16.mxu0 %v1404_v16  ;;  %1284 = vmatpush1.bf16.msra.mxu1 %v1420_v35 }
  0x90   : > { %1269 = vmatprep.subr.bf16.mxu1 %v1425_v36 }
  0x92   : > { %789 = vmatpush1.bf16.msra.mxu0 %v1402_v19 }
  0x93   : > { %790 = vmatprep.subr.bf16.mxu0 %v1407_v20  ;;  %1285 = vmatpush1.bf16.msra.mxu1 %v1423_v37 }
  0x94   : > { %1270 = vmatprep.subr.bf16.mxu1 %v1428_v38 }
  0x95   : > { %497 = vmatmul.mubr.bf16.gmra.mrb[4].mxu0 %v1392_v28 }
  0x96   : > { %506 = vmatprep.mubr.bf16.mxu0 %v1612_v0  ;;  %791 = vmatpush1.bf16.msra.mxu0 %v1405_v22 }
  0x97   : > { %792 = vmatprep.subr.bf16.mxu0 %v1410_v23  ;;  %1286 = vmatpush1.bf16.msra.mxu1 %v1426_v40 }
  0x98   : > { %1271 = vmatprep.subr.bf16.mxu1 %v1431_v41 }
  0x9a   : > { %793 = vmatpush1.bf16.msra.mxu0 %v1408_v25 }
  0x9b   : > { %794 = vmatprep.subr.bf16.mxu0 %v1413_v26  ;;  %1287 = vmatpush1.bf16.msra.mxu1 %v1429_v42 }
  0x9c   : > { %1272 = vmatprep.subr.bf16.mxu1 %v1434_v43 }
  0x9d   : > { %507 = vmatmul.mubr.bf16.gmra.mrb[8].mxu0 %v1393_v34 }
  0x9e   : > { %516 = vmatprep.mubr.bf16.mxu0 %v1612_v0  ;;  %795 = vmatpush1.bf16.msra.mxu0 %v1411_v27 }
  0x9f   : > { %796 = vmatprep.subr.bf16.mxu0 %v1416_v29  ;;  %1288 = vmatpush1.bf16.msra.mxu1 %v1432_v45 }
  0xa0   : > { %1273 = vmatprep.subr.bf16.mxu1 %v1437_v46 }
  0xa2   : > { %797 = vmatpush1.bf16.msra.mxu0 %v1414_v30 }
  0xa3   : > { %798 = vmatprep.subr.bf16.mxu0 %v1419_v31  ;;  %1289 = vmatpush1.bf16.msra.mxu1 %v1435_v47 }
  0xa4   : > { %1274 = vmatprep.subr.bf16.mxu1 %v1440_v48 }
  0xa5   : > { %517 = vmatmul.mubr.bf16.gmra.mrb[12].mxu0 %v1394_v39 }
  0xa6   : > { %526 = vmatprep.mubr.bf16.mxu0 %v1612_v0  ;;  %799 = vmatpush1.bf16.msra.mxu0 %v1417_v32 }
  0xa7   : > { %800 = vmatprep.subr.bf16.mxu0 %v1422_v33  ;;  %1290 = vmatpush1.bf16.msra.mxu1 %v1438_v50 }
  0xa8   : > { %1275 = vmatprep.subr.bf16.mxu1 %v1443_v53 }
  0xaa   : > { %801 = vmatpush1.bf16.msra.mxu0 %v1420_v35 }
  0xab   : > { %802 = vmatprep.subr.bf16.mxu0 %v1425_v36  ;;  %1291 = vmatpush1.bf16.msra.mxu1 %v1441_v54 }
  0xac   : > { %1276 = vmatprep.subr.bf16.mxu1 %v1446_v55 }
  0xad   : > { %527 = vmatmul.mubr.bf16.gmra.mrb[16].mxu0 %v1395_v44 }
  0xae   : > { %536 = vmatprep.mubr.bf16.mxu0 %v1612_v0  ;;  %803 = vmatpush1.bf16.msra.mxu0 %v1423_v37 }
  0xaf   : > { %804 = vmatprep.subr.bf16.mxu0 %v1428_v38  ;;  %1292 = vmatpush1.bf16.msra.mxu1 %v1444_v56 }
  0xb2   : > { %805 = vmatpush1.bf16.msra.mxu0 %v1426_v40 }
  0xb3   : > { %806 = vmatprep.subr.bf16.mxu0 %v1431_v41 }
  0xb5   : > { %537 = vmatmul.mubr.bf16.gmra.mrb[20].mxu0 %v1396_v49 }
  0xb6   : > { %546 = vmatprep.mubr.bf16.mxu0 %v1612_v0  ;;  %807 = vmatpush1.bf16.msra.mxu0 %v1429_v42 }
  0xb7   : > { %808 = vmatprep.subr.bf16.mxu0 %v1434_v43 }
  0xba   : > { %809 = vmatpush1.bf16.msra.mxu0 %v1432_v45 }
  0xbb   : > { %810 = vmatprep.subr.bf16.mxu0 %v1437_v46 }
  0xbd   : > { %547 = vmatmul.mubr.bf16.gmra.mrb[24].mxu0 %v1397_v51 }
  0xbe   : > { %556 = vmatprep.mubr.bf16.mxu0 %v1612_v0  ;;  %811 = vmatpush1.bf16.msra.mxu0 %v1435_v47 }
  0xbf   : > { %812 = vmatprep.subr.bf16.mxu0 %v1440_v48 }
  0xc2   : > { %813 = vmatpush1.bf16.msra.mxu0 %v1438_v50 }
  0xc3   : > { %814 = vmatprep.subr.bf16.mxu0 %v1443_v53 }
  0xc5   : > { %557 = vmatmul.mubr.bf16.gmra.mrb[28].mxu0 %v1398_v52 }
  0xc6   : > { %815 = vmatpush1.bf16.msra.mxu0 %v1441_v54 }
  0xc7   : > { %816 = vmatprep.subr.bf16.mxu0 %v1446_v55 }
  0xca   : > { %817 = vmatpush1.bf16.msra.mxu0 %v1444_v56 }
 0x160   : > { %v488_v0 = vpop.f32.mrb[0].mxu0 }
 0x161   : > { %v489_v1 = vadd.f32 %v488_v0, %v1844_v62  ;;  %v490_v2 = vpop.f32.mrb[1].mxu0 }
 0x162   : > { %v491_v3 = vadd.f32 %v490_v2, %v1848_v63  ;;  %v492_v4 = vpop.f32.mrb[2].mxu0 }
 0x163   : > { %v493_v5 = vadd.f32 %v492_v4, %v1844_v62  ;;  %v494_v6 = vpop.f32.mrb[3].mxu0  ;;  %v567_v8 = vmax.f32 %v489_v1, 0.0 }
 0x164   : > { %v495_v7 = vadd.f32 %v494_v6, %v1848_v63  ;;  %v568_v10 = vmax.f32 %v491_v3, 0.0 }
 0x165   : > { %v569_v9 = vmax.f32 %v493_v5, 0.0 }
 0x166   : > { %v570_v11 = vmax.f32 %v495_v7, 0.0 }
 0x167   : > { %v599_v12 = vpack.c.bf16 %v569_v9, %v567_v8 }
 0x168   : > { %v600_v13 = vpack.c.bf16 %v570_v11, %v568_v10  ;;  %v498_v14 = vpop.f32.mrb[4].mxu0 }
 0x169   : > { %v499_v15 = vadd.f32 %v498_v14, %v1844_v62  ;;  %v500_v16 = vpop.f32.mrb[5].mxu0 }
 0x16a   : > { %v501_v17 = vadd.f32 %v500_v16, %v1848_v63  ;;  %v502_v18 = vpop.f32.mrb[6].mxu0  ;;  %818 = vmatprep.mubr.bf16.mxu0 %v600_v13 }
 0x16b   : > { %v503_v19 = vadd.f32 %v502_v18, %v1844_v62  ;;  %v504_v20 = vpop.f32.mrb[7].mxu0  ;;  %819 = vmatmul.mubr.bf16.vlgmr.msra.gmra.mrb[32].mxu0 %v599_v12  ;;  %v571_v22 = vmax.f32 %v499_v15, 0.0 }
 0x16c   : > { %v505_v21 = vadd.f32 %v504_v20, %v1848_v63  ;;  %v572_v24 = vmax.f32 %v501_v17, 0.0 }
 0x16d   : > { %v573_v23 = vmax.f32 %v503_v19, 0.0 }
 0x16e   : > { %v574_v25 = vmax.f32 %v505_v21, 0.0 }
 0x16f   : > { %v601_v26 = vpack.c.bf16 %v573_v23, %v571_v22 }
 0x170   : > { %v602_v27 = vpack.c.bf16 %v574_v25, %v572_v24  ;;  %v508_v28 = vpop.f32.mrb[8].mxu0 }
 0x171   : > { %v509_v29 = vadd.f32 %v508_v28, %v1844_v62  ;;  %v510_v30 = vpop.f32.mrb[9].mxu0 }
 0x172   : > { %v511_v31 = vadd.f32 %v510_v30, %v1848_v63  ;;  %v512_v32 = vpop.f32.mrb[10].mxu0  ;;  %828 = vmatprep.mubr.bf16.mxu0 %v602_v27 }
 0x173   : > { %v513_v33 = vadd.f32 %v512_v32, %v1844_v62  ;;  %v514_v34 = vpop.f32.mrb[11].mxu0  ;;  %829 = vmatmul.mubr.bf16.gmra.mrb[36].mxu0 %v601_v26  ;;  %v575_v36 = vmax.f32 %v509_v29, 0.0 }
 0x174   : > { %v515_v35 = vadd.f32 %v514_v34, %v1848_v63  ;;  %v576_v38 = vmax.f32 %v511_v31, 0.0 }
 0x175   : > { %v577_v37 = vmax.f32 %v513_v33, 0.0 }
 0x176   : > { %v578_v39 = vmax.f32 %v515_v35, 0.0 }
 0x177   : > { %v603_v40 = vpack.c.bf16 %v577_v37, %v575_v36 }
 0x178   : > { %v518_v41 = vpop.f32.mrb[12].mxu0  ;;  %v604_v42 = vpack.c.bf16 %v578_v39, %v576_v38 }
 0x179   : > { %v519_v43 = vadd.f32 %v518_v41, %v1844_v62  ;;  %v520_v44 = vpop.f32.mrb[13].mxu0 }
 0x17a   : > { %v521_v45 = vadd.f32 %v520_v44, %v1848_v63  ;;  %v522_v46 = vpop.f32.mrb[14].mxu0  ;;  %838 = vmatprep.mubr.bf16.mxu1 %v604_v42 }
 0x17b   : > { %v523_v47 = vadd.f32 %v522_v46, %v1844_v62  ;;  %v524_v48 = vpop.f32.mrb[15].mxu0  ;;  %839 = vmatmul.mubr.bf16.vlgmr.msra.gmra.mrb[0].mxu1 %v603_v40  ;;  %v579_v50 = vmax.f32 %v519_v43, 0.0 }
 0x17c   : > { %v525_v49 = vadd.f32 %v524_v48, %v1848_v63  ;;  %v580_v52 = vmax.f32 %v521_v45, 0.0 }
 0x17d   : > { %v581_v51 = vmax.f32 %v523_v47, 0.0 }
 0x17e   : > { %v582_v53 = vmax.f32 %v525_v49, 0.0 }
 0x17f   : > { %v605_v54 = vpack.c.bf16 %v581_v51, %v579_v50 }
 0x180   : > { %v606_v55 = vpack.c.bf16 %v582_v53, %v580_v52  ;;  %v528_v56 = vpop.f32.mrb[16].mxu0  ;;  %v1163_v53 = vld [vmem:[%s1996_s2 + $0x1] ss:$2 sm:$0x3] }
 0x181   : > { %v529_v57 = vadd.f32 %v528_v56, %v1844_v62  ;;  %v530_v60 = vpop.f32.mrb[17].mxu0 }
 0x182   : > { %v531_v0 = vadd.f32 %v530_v60, %v1848_v63  ;;  %v532_v1 = vpop.f32.mrb[18].mxu0  ;;  %848 = vmatprep.mubr.bf16.mxu1 %v606_v55 }
 0x183   : > { %v533_v2 = vadd.f32 %v532_v1, %v1844_v62  ;;  %v534_v3 = vpop.f32.mrb[19].mxu0  ;;  %849 = vmatmul.mubr.bf16.gmra.mrb[4].mxu1 %v605_v54  ;;  %v583_v5 = vmax.f32 %v529_v57, 0.0  ;;  %v1891_v54 = vrot.slane %v1163_v53, %v322_v61 }
 0x184   : > { %v535_v4 = vadd.f32 %v534_v3, %v1848_v63  ;;  %v584_v7 = vmax.f32 %v531_v0, 0.0 }
 0x185   : > { %v585_v6 = vmax.f32 %v533_v2, 0.0 }
 0x186   : > { %v586_v8 = vmax.f32 %v535_v4, 0.0 }
 0x187   : > { %v607_v9 = vpack.c.bf16 %v585_v6, %v583_v5 }
 0x188   : > { %v608_v10 = vpack.c.bf16 %v586_v8, %v584_v7  ;;  %v538_v11 = vpop.f32.mrb[20].mxu0 }
 0x189   : > { %v539_v12 = vadd.f32 %v538_v11, %v1844_v62  ;;  %v540_v13 = vpop.f32.mrb[21].mxu0 }
 0x18a   : > { %v541_v14 = vadd.f32 %v540_v13, %v1848_v63  ;;  %v542_v15 = vpop.f32.mrb[22].mxu0  ;;  %858 = vmatprep.mubr.bf16.mxu1 %v608_v10 }
 0x18b   : > { %v543_v16 = vadd.f32 %v542_v15, %v1844_v62  ;;  %v544_v17 = vpop.f32.mrb[23].mxu0  ;;  %859 = vmatmul.mubr.bf16.gmra.mrb[8].mxu1 %v607_v9  ;;  %v587_v19 = vmax.f32 %v539_v12, 0.0 }
 0x18c   : > { %v545_v18 = vadd.f32 %v544_v17, %v1848_v63  ;;  %v588_v21 = vmax.f32 %v541_v14, 0.0 }
 0x18d   : > { %v589_v20 = vmax.f32 %v543_v16, 0.0 }
 0x18e   : > { %v590_v22 = vmax.f32 %v545_v18, 0.0 }
 0x18f   : > { %v609_v23 = vpack.c.bf16 %v589_v20, %v587_v19 }
 0x190   : > { %v610_v24 = vpack.c.bf16 %v590_v22, %v588_v21  ;;  %v548_v25 = vpop.f32.mrb[24].mxu0 }
 0x191   : > { %v549_v26 = vadd.f32 %v548_v25, %v1844_v62  ;;  %v550_v27 = vpop.f32.mrb[25].mxu0 }
 0x192   : > { %v551_v28 = vadd.f32 %v550_v27, %v1848_v63  ;;  %v552_v29 = vpop.f32.mrb[26].mxu0  ;;  %868 = vmatprep.mubr.bf16.mxu1 %v610_v24 }
 0x193   : > { %v553_v30 = vadd.f32 %v552_v29, %v1844_v62  ;;  %v554_v31 = vpop.f32.mrb[27].mxu0  ;;  %869 = vmatmul.mubr.bf16.gmra.mrb[12].mxu1 %v609_v23  ;;  %v591_v33 = vmax.f32 %v549_v26, 0.0 }
 0x194   : > { %v555_v32 = vadd.f32 %v554_v31, %v1848_v63  ;;  %v592_v35 = vmax.f32 %v551_v28, 0.0 }
 0x195   : > { %v593_v34 = vmax.f32 %v553_v30, 0.0 }
 0x196   : > { %v594_v36 = vmax.f32 %v555_v32, 0.0 }
 0x197   : > { %v611_v37 = vpack.c.bf16 %v593_v34, %v591_v33 }
 0x198   : > { %v612_v38 = vpack.c.bf16 %v594_v36, %v592_v35  ;;  %v558_v39 = vpop.f32.mrb[28].mxu0 }
 0x199   : > { %v559_v40 = vadd.f32 %v558_v39, %v1844_v62  ;;  %v560_v41 = vpop.f32.mrb[29].mxu0 }
 0x19a   : > { %v561_v42 = vadd.f32 %v560_v41, %v1848_v63  ;;  %v562_v43 = vpop.f32.mrb[30].mxu0  ;;  %878 = vmatprep.mubr.bf16.mxu1 %v612_v38 }
 0x19b   : > { %v563_v44 = vadd.f32 %v562_v43, %v1844_v62  ;;  %v564_v45 = vpop.f32.mrb[31].mxu0  ;;  %879 = vmatmul.mubr.bf16.gmra.mrb[16].mxu1 %v611_v37  ;;  %v595_v47 = vmax.f32 %v559_v40, 0.0  ;;  %v1887_v62 = vrot.slane %v1163_v53, %v318_v59 }
 0x19c   : > { %v565_v46 = vadd.f32 %v564_v45, %v1848_v63  ;;  %v596_v49 = vmax.f32 %v561_v42, 0.0 }
 0x19d   : > { %v597_v48 = vmax.f32 %v563_v44, 0.0 }
 0x19e   : > { %v598_v50 = vmax.f32 %v565_v46, 0.0 }
 0x19f   : > { %v613_v51 = vpack.c.bf16 %v597_v48, %v595_v47 }
 0x1a0   : > { %v614_v52 = vpack.c.bf16 %v598_v50, %v596_v49 }
 0x1a2   : > { %888 = vmatprep.mubr.bf16.mxu1 %v614_v52 }
 0x1a3   : > { %889 = vmatmul.mubr.bf16.gmra.mrb[20].mxu1 %v613_v51 }
 0x23e   : > { %v820_v63 = vpop.f32.mrb[32].mxu0 }
 0x23f   : > { %v821_v55 = vadd.f32 %v820_v63, %v1887_v62  ;;  %v822_v56 = vpop.f32.mrb[33].mxu0 }
 0x240   : > { %v823_v57 = vadd.f32 %v822_v56, %v1891_v54  ;;  %v824_v60 = vpop.f32.mrb[34].mxu0 }
 0x241   : > { %v899_v0 = vmax.f32 %v821_v55, 0.0  ;;  %v825_v1 = vadd.f32 %v824_v60, %v1887_v62  ;;  %v826_v2 = vpop.f32.mrb[35].mxu0 }
 0x242   : > { %v900_v3 = vmax.f32 %v823_v57, 0.0  ;;  %v827_v59 = vadd.f32 %v826_v2, %v1891_v54 }
 0x243   : > { %v901_v4 = vmax.f32 %v825_v1, 0.0 }
 0x244   : > { %v1243_v5 = vpack.c.bf16 %v900_v3, %v899_v0  ;;  %v902_v58 = vmax.f32 %v827_v59, 0.0 }
 0x246   : > { %1027 = vst [vmem:[%s1898_s6] sm:$0xff] %v1243_v5  ;;  %v1244_v61 = vpack.c.bf16 %v902_v58, %v901_v4  ;;  %v830_v6 = vpop.f32.mrb[36].mxu0 }
 0x247   : > { %v831_v7 = vadd.f32 %v830_v6, %v1887_v62  ;;  %v832_v8 = vpop.f32.mrb[37].mxu0 }
 0x248   : > { %1028 = vst [vmem:[%s1898_s6 + $0x8] sm:$0xff] %v1244_v61  ;;  %v833_v9 = vadd.f32 %v832_v8, %v1891_v54  ;;  %v834_v10 = vpop.f32.mrb[38].mxu0 }
 0x249   : > { %v903_v11 = vmax.f32 %v831_v7, 0.0  ;;  %v835_v12 = vadd.f32 %v834_v10, %v1887_v62  ;;  %v836_v13 = vpop.f32.mrb[39].mxu0 }
 0x24a   : > { %v904_v14 = vmax.f32 %v833_v9, 0.0  ;;  %v837_v15 = vadd.f32 %v836_v13, %v1891_v54 }
 0x24b   : > { %v905_v16 = vmax.f32 %v835_v12, 0.0 }
 0x24c   : > { %v1245_v17 = vpack.c.bf16 %v904_v14, %v903_v11  ;;  %v906_v18 = vmax.f32 %v837_v15, 0.0 }
 0x24e   : > { %1029 = vst [vmem:[%s1898_s6 + $0x10] sm:$0xff] %v1245_v17  ;;  %v1246_v19 = vpack.c.bf16 %v906_v18, %v905_v16  ;;  %v840_v20 = vpop.f32.mrb[0].mxu1 }
 0x24f   : > { %v841_v21 = vadd.f32 %v840_v20, %v1887_v62  ;;  %v842_v22 = vpop.f32.mrb[1].mxu1 }
 0x250   : > { %1030 = vst [vmem:[%s1898_s6 + $0x18] sm:$0xff] %v1246_v19  ;;  %v843_v23 = vadd.f32 %v842_v22, %v1891_v54  ;;  %v844_v24 = vpop.f32.mrb[2].mxu1 }
 0x251   : > { %v907_v25 = vmax.f32 %v841_v21, 0.0  ;;  %v845_v26 = vadd.f32 %v844_v24, %v1887_v62  ;;  %v846_v27 = vpop.f32.mrb[3].mxu1 }
 0x252   : > { %v908_v28 = vmax.f32 %v843_v23, 0.0  ;;  %v847_v29 = vadd.f32 %v846_v27, %v1891_v54 }
 0x253   : > { %v909_v30 = vmax.f32 %v845_v26, 0.0 }
 0x254   : > { %v1247_v31 = vpack.c.bf16 %v908_v28, %v907_v25  ;;  %v910_v32 = vmax.f32 %v847_v29, 0.0 }
 0x256   : > { %1031 = vst [vmem:[%s1898_s6 + $0x20] sm:$0xff] %v1247_v31  ;;  %v1248_v33 = vpack.c.bf16 %v910_v32, %v909_v30  ;;  %v850_v34 = vpop.f32.mrb[4].mxu1 }
 0x257   : > { %v851_v35 = vadd.f32 %v850_v34, %v1887_v62  ;;  %v852_v36 = vpop.f32.mrb[5].mxu1 }
 0x258   : > { %1032 = vst [vmem:[%s1898_s6 + $0x28] sm:$0xff] %v1248_v33  ;;  %v853_v37 = vadd.f32 %v852_v36, %v1891_v54  ;;  %v854_v38 = vpop.f32.mrb[6].mxu1 }
 0x259   : > { %v911_v39 = vmax.f32 %v851_v35, 0.0  ;;  %v855_v40 = vadd.f32 %v854_v38, %v1887_v62  ;;  %v856_v41 = vpop.f32.mrb[7].mxu1 }
 0x25a   : > { %v912_v42 = vmax.f32 %v853_v37, 0.0  ;;  %v857_v43 = vadd.f32 %v856_v41, %v1891_v54 }
 0x25b   : > { %v913_v44 = vmax.f32 %v855_v40, 0.0 }
 0x25c   : > { %v1249_v45 = vpack.c.bf16 %v912_v42, %v911_v39  ;;  %v914_v46 = vmax.f32 %v857_v43, 0.0 }
 0x25e   : > { %1033 = vst [vmem:[%s1898_s6 + $0x30] sm:$0xff] %v1249_v45  ;;  %v1250_v47 = vpack.c.bf16 %v914_v46, %v913_v44  ;;  %v860_v48 = vpop.f32.mrb[8].mxu1 }
 0x25f   : > { %v861_v49 = vadd.f32 %v860_v48, %v1887_v62  ;;  %v862_v50 = vpop.f32.mrb[9].mxu1 }
 0x260   : > { %1034 = vst [vmem:[%s1898_s6 + $0x38] sm:$0xff] %v1250_v47  ;;  %v863_v51 = vadd.f32 %v862_v50, %v1891_v54  ;;  %v864_v52 = vpop.f32.mrb[10].mxu1 }
 0x261   : > { %v915_v53 = vmax.f32 %v861_v49, 0.0  ;;  %v865_v63 = vadd.f32 %v864_v52, %v1887_v62  ;;  %v866_v55 = vpop.f32.mrb[11].mxu1 }
 0x262   : > { %v916_v56 = vmax.f32 %v863_v51, 0.0  ;;  %v867_v57 = vadd.f32 %v866_v55, %v1891_v54 }
 0x263   : > { %v917_v60 = vmax.f32 %v865_v63, 0.0 }
 0x264   : > { %v1251_v0 = vpack.c.bf16 %v916_v56, %v915_v53  ;;  %v918_v1 = vmax.f32 %v867_v57, 0.0 }
 0x266   : > { %1035 = vst [vmem:[%s1898_s6 + $0x40] sm:$0xff] %v1251_v0  ;;  %v1252_v2 = vpack.c.bf16 %v918_v1, %v917_v60  ;;  %v870_v3 = vpop.f32.mrb[12].mxu1 }
 0x267   : > { %v871_v59 = vadd.f32 %v870_v3, %v1887_v62  ;;  %v872_v4 = vpop.f32.mrb[13].mxu1 }
 0x268   : > { %1036 = vst [vmem:[%s1898_s6 + $0x48] sm:$0xff] %v1252_v2  ;;  %v873_v5 = vadd.f32 %v872_v4, %v1891_v54  ;;  %v874_v58 = vpop.f32.mrb[14].mxu1 }
 0x269   : > { %v919_v61 = vmax.f32 %v871_v59, 0.0  ;;  %v875_v6 = vadd.f32 %v874_v58, %v1887_v62  ;;  %v876_v7 = vpop.f32.mrb[15].mxu1 }
 0x26a   : > { %v920_v8 = vmax.f32 %v873_v5, 0.0  ;;  %v877_v9 = vadd.f32 %v876_v7, %v1891_v54 }
 0x26b   : > { %v921_v10 = vmax.f32 %v875_v6, 0.0 }
 0x26c   : > { %v1253_v11 = vpack.c.bf16 %v920_v8, %v919_v61  ;;  %v922_v12 = vmax.f32 %v877_v9, 0.0 }
 0x26e   : > { %1037 = vst [vmem:[%s1898_s6 + $0x50] sm:$0xff] %v1253_v11  ;;  %v1254_v13 = vpack.c.bf16 %v922_v12, %v921_v10  ;;  %v880_v14 = vpop.f32.mrb[16].mxu1 }
 0x26f   : > { %v881_v15 = vadd.f32 %v880_v14, %v1887_v62  ;;  %v882_v16 = vpop.f32.mrb[17].mxu1 }
 0x270   : > { %1038 = vst [vmem:[%s1898_s6 + $0x58] sm:$0xff] %v1254_v13  ;;  %v883_v17 = vadd.f32 %v882_v16, %v1891_v54  ;;  %v884_v18 = vpop.f32.mrb[18].mxu1 }
 0x271   : > { %v923_v19 = vmax.f32 %v881_v15, 0.0  ;;  %v885_v20 = vadd.f32 %v884_v18, %v1887_v62  ;;  %v886_v21 = vpop.f32.mrb[19].mxu1 }
 0x272   : > { %v924_v22 = vmax.f32 %v883_v17, 0.0  ;;  %v887_v23 = vadd.f32 %v886_v21, %v1891_v54 }
 0x273   : > { %v925_v24 = vmax.f32 %v885_v20, 0.0 }
 0x274   : > { %v1255_v25 = vpack.c.bf16 %v924_v22, %v923_v19  ;;  %v926_v26 = vmax.f32 %v887_v23, 0.0 }
 0x276   : > { %1039 = vst [vmem:[%s1898_s6 + $0x60] sm:$0xff] %v1255_v25  ;;  %v1256_v27 = vpack.c.bf16 %v926_v26, %v925_v24  ;;  %v890_v28 = vpop.f32.mrb[20].mxu1 }
 0x277   : > { %v891_v29 = vadd.f32 %v890_v28, %v1887_v62  ;;  %v892_v30 = vpop.f32.mrb[21].mxu1 }
 0x278   : > { %1040 = vst [vmem:[%s1898_s6 + $0x68] sm:$0xff] %v1256_v27  ;;  %v893_v31 = vadd.f32 %v892_v30, %v1891_v54  ;;  %v894_v32 = vpop.f32.mrb[22].mxu1 }
 0x279   : > { %v927_v33 = vmax.f32 %v891_v29, 0.0  ;;  %v895_v34 = vadd.f32 %v894_v32, %v1887_v62  ;;  %v896_v35 = vpop.f32.mrb[23].mxu1 }
 0x27a   : > { %v928_v36 = vmax.f32 %v893_v31, 0.0  ;;  %v897_v37 = vadd.f32 %v896_v35, %v1891_v54 }
 0x27b   : > { %v929_v38 = vmax.f32 %v895_v34, 0.0 }
 0x27c   : > { %v1257_v39 = vpack.c.bf16 %v928_v36, %v927_v33  ;;  %v930_v40 = vmax.f32 %v897_v37, 0.0 }
 0x27e   : > { %1041 = vst [vmem:[%s1898_s6 + $0x70] sm:$0xff] %v1257_v39  ;;  %v1258_v62 = vpack.c.bf16 %v930_v40, %v929_v38 }
 0x280   : > { %1042 = vst [vmem:[%s1898_s6 + $0x78] sm:$0xff] %v1258_v62 }
 0x281   : > { %1546 = shalt.err (!%p1543_p7)
}
 0x282   : > { %s1547_s10 = scalar_lea.hbm %s1947_s12, 2048  ;;  %s1551_s27 = scalar_lea.hbm %s1998_s4, 16384 }
 0x283   : > { %p1548_p9 = scmp.ne.s32.totalorder %s1947_s12, %s1547_s10  ;;  %p1552_p5 = scmp.lt.u32.totalorder %s1947_s12, %s1998_s4 }
 0x284   : > { %p1553_p10 = scmp.lt.u32.totalorder %s1551_s27, %s1547_s10  ;;  %p1555_p1 = scmp.lt.u32.totalorder %s1547_s10, %s1947_s12 }
 0x285   : > { %p1549_p12 = pnand %p1548_p9, %p1753_p4 }
 0x286   : > { %p1554_p11 = por %p1553_p10, %p1552_p5 }
 0x287   : > { %p1550_p0 = pneg %p1549_p12 }
 0x288   : > { %p1556_p2 = por %p1555_p1, %p1554_p11 }
 0x28a   : > { %p1557_p6 = pnand %p1556_p2, %p1550_p0 }
 0x28c   : > { %1560 = shalt.err (!%p1557_p6)
}
 0x28d   : > { %s1614_s6 = smov 128   ;;  %s1615_s24 = smov 8  }
 0x28e   : > { %1303 = dma.vmem_to_hbm [thread:$0]  (%p1753_p4), %s1949_s20, 2048, %s1947_s12, %s1044_s29, %s1614_s6, %s1614_s6, %s1615_s24  }
 0x28f PF: > { %p1325_p8 = scmp.ge.s32.totalorder %s1603_s18, 2  ;;  %s1073_s28 = sand.u32 1, %s1591_s15  }
 0x290   : > { %p2013_p13 = scmp.ne.s32.totalorder %s2003_s22, 0  ;;  %s1074_s11 = scalar_lea.sflag [#allocation4], %s1073_s28 }
 0x292   : > { %p1317_p3 = pnand %p1325_p8, %p2013_p13 }
 0x294   : > { %1586 = dma.done.wait (!%p1317_p3), %s1074_s11, 2048  }
 0x295   : > { %1588 = vsyncadd (!%p1317_p3), %s1074_s11, 4294965248  ;;  %p18_p7 = scmp.ge.s32.totalorder %s1743_s9, 10   ;;  %s2014_s15 = smov %s1595_s16 }
 0x296   : > { %s2015_s16 = smov %s1599_s17  ;;  %s2016_s17 = smov %s1759_s14 }
 0x297   : > { %s2017_s18 = smov %s1743_s9  ;;  %20 = sbr.rel (!%p18_p7) target bundleno = 6 (0x6), region = 90 }
 0x29e   :  { %1079 = vsyncpa [#allocation3], 1 }
 0x29f   :  { %1081 = vsyncpa [#allocation3 + $0x1], 1 }
 0x2a0   :  { %1082 = vsyncpa [#allocation6], 1 }
 0x2a1   :  { %1083 = vsyncpa [#allocation4], 1 }
 0x2a2   :  { %1085 = vsyncpa [#allocation4 + $0x1], 1 }

</bundles_post_ra>
